<compile_context>
chip_gen: v7x
topology: tpu7x:2x2x1
jax: 0.10.0
libtpu: 0.0.40
codegen_flags: <defaults>
</compile_context>

<pallas_src>
import jax
import jax.numpy as jnp
from jax.experimental import pallas as pl
from jax.experimental.pallas import tpu as pltpu


def aam_kernel(xh_ref, xl_ref, p_ref, out_ref):
    # xh_ref / xl_ref / out_ref : (NB, C, HW)  channel-major, HW is the lane axis.
    # p_ref                     : (4C+4, Co, 1) packed params, out-channels on sublanes:
    #                             [w1^T | w2^T | w3^T | w4^T | b1 | b2 | b3 | b4]
    nb, c_in, hw = xh_ref.shape
    co = p_ref.shape[1]
    f32 = jnp.float32

    # Offsets into the packed parameter stack (all static Python ints).
    W1 = 0
    W2 = c_in
    W3 = 2 * c_in
    W4 = 2 * c_in + co
    B = 3 * c_in + co

    def matvec(base, v, n_in):
        # y[n, o, 0] = sum_c W[o, c] * v[n, c, 0], as VPU broadcast-FMAs (no MXU).
        acc = p_ref[base][None, :, :] * v[:, 0:1, :]
        for c in range(1, n_in):
            acc = acc + p_ref[base + c][None, :, :] * v[:, c:c + 1, :]
        return acc                                            # (nb, co, 1)

    # ---- global average pooling over spatial (lane reduce); 1/HW folded into w1/w2 ----
    p_high = jnp.sum(xh_ref[...].astype(f32), axis=-1, keepdims=True)   # (nb, C, 1)
    p_low = jnp.sum(xl_ref[...].astype(f32), axis=-1, keepdims=True)    # (nb, C, 1)

    # ---- conv1 / conv2 (folded BN) + ReLU on pooled vectors ----
    wh = jnp.maximum(matvec(W1, p_high, c_in) + p_ref[B + 0][None], 0.0)  # (nb, co, 1)
    wl = jnp.maximum(matvec(W2, p_low, c_in) + p_ref[B + 1][None], 0.0)   # (nb, co, 1)

    # ---- conv3 + softmax over the channel (sublane) axis, per batch element ----
    z = matvec(W3, wh + wl, co) + p_ref[B + 2][None]                      # (nb, co, 1)
    z = z - jnp.max(z, axis=1, keepdims=True)
    e = jnp.exp(z)
    attn = e / jnp.sum(e, axis=1, keepdims=True)                          # (nb, co, 1)

    # ---- conv4 on the full-res low input: unrolled per-input-channel VPU FMA ----
    # (BN scale folded into w4; folded bias seeds the accumulator.)
    acc = p_ref[B + 3][None] + p_ref[W4][None] * xl_ref[:, 0:1, :].astype(f32)
    for c in range(1, c_in):
        acc = acc + p_ref[W4 + c][None] * xl_ref[:, c:c + 1, :].astype(f32)
    low = jnp.maximum(acc, 0.0)                                           # (nb, co, hw)

    # ---- residual combine (attention broadcast over the spatial lanes) ----
    out_ref[...] = (xh_ref[...].astype(f32) + low * attn).astype(out_ref.dtype)


def _pick_nb(n, per_batch_bytes, target_bytes=1 << 20):
    """Largest divisor of n such that each activation block is ~<= target_bytes,
    while keeping at least 2 grid steps (so v7x's two TensorCores both get work)."""
    cap = max(1, target_bytes // max(int(per_batch_bytes), 1))
    if n >= 2:
        cap = min(cap, n // 2)
    cap = max(cap, 1)
    nb = 1
    for d in range(1, min(cap, n) + 1):
        if n % d == 0:
            nb = d
    return nb


def aam(input_high, input_low, params, eps=1e-5):
    """input_high / input_low: (N, C, H, W) in PyTorch NCHW layout (any float dtype)."""
    N, Ci, H, W = input_high.shape
    Co = params["w1"].shape[0]
    assert input_low.shape == (N, Ci, H, W)
    assert Co == Ci, "final residual add requires out_ch == in_ch"
    HW = H * W
    act_dtype = input_high.dtype
    f32 = jnp.float32

    # Free view-reshapes: NCHW -> (N, C, H*W); spatial axis stays the lane axis.
    # Keep native dtype (no wrapper cast): HBM traffic halves for bf16 inputs.
    xh = input_high.reshape(N, Ci, HW)
    xl = input_low.reshape(N, Ci, HW)

    def fold(k, extra_scale=1.0):
        # Fold conv bias + eval-mode BN into the weight / a single per-channel bias.
        w = params[f"w{k}"].reshape(Co, Ci).astype(f32)
        s = (params[f"g{k}"] / jnp.sqrt(params[f"v{k}"] + eps)).astype(f32)
        b = ((params[f"b{k}"] - params[f"m{k}"]) * s + params[f"beta{k}"]).astype(f32)
        return w * s[:, None] * extra_scale, b

    w1, b1 = fold(1, 1.0 / HW)   # 1/HW folds the global-average-pool divisor
    w2, b2 = fold(2, 1.0 / HW)
    w4, b4 = fold(4)
    w3 = params["w3"].reshape(Co, Co).astype(f32)
    b3 = params["b3"].astype(f32)

    # Single packed parameter operand: transposed weights as (Ci, Co, 1) stacks
    # (out-channels on sublanes) followed by the four bias columns.
    packed = jnp.concatenate(
        [w1.T[:, :, None], w2.T[:, :, None], w3.T[:, :, None], w4.T[:, :, None],
         b1.reshape(1, Co, 1), b2.reshape(1, Co, 1),
         b3.reshape(1, Co, 1), b4.reshape(1, Co, 1)],
        axis=0)                                               # (3*Ci + Co + 4, Co, 1)

    nb = _pick_nb(N, Ci * HW * input_high.dtype.itemsize)
    grid = (N // nb,)

    act_spec = lambda: pl.BlockSpec((nb, Ci, HW), lambda n: (n, 0, 0))

    out = pl.pallas_call(
        aam_kernel,
        out_shape=jax.ShapeDtypeStruct((N, Co, HW), act_dtype),
        grid_spec=pltpu.PrefetchScalarGridSpec(
            num_scalar_prefetch=0,
            grid=grid,
            in_specs=[
                act_spec(),                                          # input_high
                act_spec(),                                          # input_low
                pl.BlockSpec(packed.shape, lambda n: (0, 0, 0)),     # packed params
            ],
            out_specs=pl.BlockSpec((nb, Co, HW), lambda n: (n, 0, 0)),
        ),
        compiler_params=pltpu.CompilerParams(
            dimension_semantics=("parallel",)),
        # out = input_high + ... with a 1:1 block mapping -> donate input_high's buffer.
        input_output_aliases={0: 0},
    )(xh, xl, packed)

    return out.reshape(N, Co, H, W)


def reference(input_high, input_low, params, eps=1e-5):
    """Pure-JAX reference of the PyTorch forward (eval-mode BN)."""
    def conv1x1(x, w4d, b):
        w = w4d.reshape(w4d.shape[0], w4d.shape[1])
        return jnp.einsum("oc,nchw->nohw", w, x) + b[None, :, None, None]

    def cbr(x, k):
        y = conv1x1(x, params[f"w{k}"], params[f"b{k}"])
        y = (y - params[f"m{k}"][None, :, None, None]) \
            / jnp.sqrt(params[f"v{k}"] + eps)[None, :, None, None]
        y = y * params[f"g{k}"][None, :, None, None] + params[f"beta{k}"][None, :, None, None]
        return jnp.maximum(y, 0.0)

    mid_high = jnp.mean(input_high, axis=(2, 3), keepdims=True)
    weight_high = cbr(mid_high, 1)
    mid_low = jnp.mean(input_low, axis=(2, 3), keepdims=True)
    weight_low = cbr(mid_low, 2)
    z = conv1x1(weight_low + weight_high, params["w3"], params["b3"])
    weight = jax.nn.softmax(z, axis=1)
    low = cbr(input_low, 4)
    return input_high + low * weight


if __name__ == "__main__":
    key = jax.random.PRNGKey(0)
    N, C, H, W = 2, 8, 16, 16
    ks = jax.random.split(key, 24)

    input_high = jax.random.normal(ks[0], (N, C, H, W), jnp.float32)
    input_low = jax.random.normal(ks[1], (N, C, H, W), jnp.float32)

    params = {}
    idx = 2
    for k in ("1", "2", "4"):
        params[f"w{k}"] = 0.3 * jax.random.normal(ks[idx], (C, C, 1, 1), jnp.float32); idx += 1
        params[f"b{k}"] = 0.1 * jax.random.normal(ks[idx], (C,), jnp.float32); idx += 1
        params[f"g{k}"] = 1.0 + 0.1 * jax.random.normal(ks[idx], (C,), jnp.float32); idx += 1
        params[f"beta{k}"] = 0.1 * jax.random.normal(ks[idx], (C,), jnp.float32); idx += 1
        params[f"m{k}"] = 0.1 * jax.random.normal(ks[idx], (C,), jnp.float32); idx += 1
        params[f"v{k}"] = 0.5 + jax.random.uniform(ks[idx], (C,), jnp.float32); idx += 1
    params["w3"] = 0.3 * jax.random.normal(ks[idx], (C, C, 1, 1), jnp.float32); idx += 1
    params["b3"] = 0.1 * jax.random.normal(ks[idx], (C,), jnp.float32); idx += 1

    # Compute the reference first (the kernel call may alias/donate input_high's buffer).
    ref = reference(input_high, input_low, params)
    ref = jax.block_until_ready(ref)

    out = aam(input_high, input_low, params)
    out = jax.block_until_ready(out)

    assert out.shape == ref.shape == (N, C, H, W)
    max_err = float(jnp.max(jnp.abs(out - ref)))
    if max_err > 1e-3:
        raise AssertionError(f"kernel/reference mismatch: max abs err = {max_err}")

    print("KERNEL_OK")
</pallas_src>

<mosaic_0001>
module attributes {stable_mosaic.version = 11 : i64} {
  func.func @aam_kernel(%arg0: i32, %arg1: memref<1x8x256xf32, #tpu.memory_space<vmem>>, %arg2: memref<1x8x256xf32, #tpu.memory_space<vmem>>, %arg3: memref<36x8x1xf32, #tpu.memory_space<vmem>>, %arg4: memref<1x8x256xf32, #tpu.memory_space<vmem>>) attributes {dimension_semantics = [#tpu.dimension_semantics<parallel>], iteration_bounds = array<i64: 2>, scalar_prefetch = 0 : i64, scratch_operands = 0 : i64, tpu.core_type = #tpu.core_type<tc>, window_params = [{transform_indices = @transform_0, window_bounds = array<i64: 1, 8, 256>}, {transform_indices = @transform_1, window_bounds = array<i64: 1, 8, 256>}, {pipeline_mode = #tpu.pipeline_mode<synchronous>, transform_indices = @transform_2, window_bounds = array<i64: 36, 8, 1>}, {transform_indices = @transform_3, window_bounds = array<i64: 1, 8, 256>}]} {
    %c0 = arith.constant 0 : index
    %c0_0 = arith.constant 0 : index
    %c0_1 = arith.constant 0 : index
    %0 = vector.load %arg1[%c0, %c0_0, %c0_1] : memref<1x8x256xf32, #tpu.memory_space<vmem>>, vector<1x8x256xf32>
    %cst = arith.constant dense<0.000000e+00> : vector<1x8xf32>
    %1 = vector.multi_reduction <add>, %0, %cst [2] : vector<1x8x256xf32> to vector<1x8xf32>
    %2 = vector.shape_cast %1 : vector<1x8xf32> to vector<1x8x1xf32>
    %c0_2 = arith.constant 0 : index
    %c0_3 = arith.constant 0 : index
    %c0_4 = arith.constant 0 : index
    %3 = vector.load %arg2[%c0_2, %c0_3, %c0_4] : memref<1x8x256xf32, #tpu.memory_space<vmem>>, vector<1x8x256xf32>
    %cst_5 = arith.constant dense<0.000000e+00> : vector<1x8xf32>
    %4 = vector.multi_reduction <add>, %3, %cst_5 [2] : vector<1x8x256xf32> to vector<1x8xf32>
    %5 = vector.shape_cast %4 : vector<1x8xf32> to vector<1x8x1xf32>
    %c0_6 = arith.constant 0 : index
    %c0_7 = arith.constant 0 : index
    %c0_8 = arith.constant 0 : index
    %6 = vector.load %arg3[%c0_6, %c0_7, %c0_8] : memref<36x8x1xf32, #tpu.memory_space<vmem>>, vector<1x8x1xf32>
    %7 = vector.shape_cast %6 : vector<1x8x1xf32> to vector<8x1xf32>
    %8 = vector.shape_cast %7 : vector<8x1xf32> to vector<1x8x1xf32>
    %9 = vector.extract_strided_slice %2 {offsets = [0, 0, 0], sizes = [1, 1, 1], strides = [1, 1, 1]} : vector<1x8x1xf32> to vector<1x1x1xf32>
    %10 = vector.broadcast %9 : vector<1x1x1xf32> to vector<1x8x1xf32>
    %11 = arith.mulf %8, %10 : vector<1x8x1xf32>
    %c1 = arith.constant 1 : index
    %c0_9 = arith.constant 0 : index
    %c0_10 = arith.constant 0 : index
    %12 = vector.load %arg3[%c1, %c0_9, %c0_10] : memref<36x8x1xf32, #tpu.memory_space<vmem>>, vector<1x8x1xf32>
    %13 = vector.shape_cast %12 : vector<1x8x1xf32> to vector<8x1xf32>
    %14 = vector.shape_cast %13 : vector<8x1xf32> to vector<1x8x1xf32>
    %15 = vector.extract_strided_slice %2 {offsets = [0, 1, 0], sizes = [1, 1, 1], strides = [1, 1, 1]} : vector<1x8x1xf32> to vector<1x1x1xf32>
    %16 = vector.broadcast %15 : vector<1x1x1xf32> to vector<1x8x1xf32>
    %17 = arith.mulf %14, %16 : vector<1x8x1xf32>
    %18 = arith.addf %11, %17 : vector<1x8x1xf32>
    %c2 = arith.constant 2 : index
    %c0_11 = arith.constant 0 : index
    %c0_12 = arith.constant 0 : index
    %19 = vector.load %arg3[%c2, %c0_11, %c0_12] : memref<36x8x1xf32, #tpu.memory_space<vmem>>, vector<1x8x1xf32>
    %20 = vector.shape_cast %19 : vector<1x8x1xf32> to vector<8x1xf32>
    %21 = vector.shape_cast %20 : vector<8x1xf32> to vector<1x8x1xf32>
    %22 = vector.extract_strided_slice %2 {offsets = [0, 2, 0], sizes = [1, 1, 1], strides = [1, 1, 1]} : vector<1x8x1xf32> to vector<1x1x1xf32>
    %23 = vector.broadcast %22 : vector<1x1x1xf32> to vector<1x8x1xf32>
    %24 = arith.mulf %21, %23 : vector<1x8x1xf32>
    %25 = arith.addf %18, %24 : vector<1x8x1xf32>
    %c3 = arith.constant 3 : index
    %c0_13 = arith.constant 0 : index
    %c0_14 = arith.constant 0 : index
    %26 = vector.load %arg3[%c3, %c0_13, %c0_14] : memref<36x8x1xf32, #tpu.memory_space<vmem>>, vector<1x8x1xf32>
    %27 = vector.shape_cast %26 : vector<1x8x1xf32> to vector<8x1xf32>
    %28 = vector.shape_cast %27 : vector<8x1xf32> to vector<1x8x1xf32>
    %29 = vector.extract_strided_slice %2 {offsets = [0, 3, 0], sizes = [1, 1, 1], strides = [1, 1, 1]} : vector<1x8x1xf32> to vector<1x1x1xf32>
    %30 = vector.broadcast %29 : vector<1x1x1xf32> to vector<1x8x1xf32>
    %31 = arith.mulf %28, %30 : vector<1x8x1xf32>
    %32 = arith.addf %25, %31 : vector<1x8x1xf32>
    %c4 = arith.constant 4 : index
    %c0_15 = arith.constant 0 : index
    %c0_16 = arith.constant 0 : index
    %33 = vector.load %arg3[%c4, %c0_15, %c0_16] : memref<36x8x1xf32, #tpu.memory_space<vmem>>, vector<1x8x1xf32>
    %34 = vector.shape_cast %33 : vector<1x8x1xf32> to vector<8x1xf32>
    %35 = vector.shape_cast %34 : vector<8x1xf32> to vector<1x8x1xf32>
    %36 = vector.extract_strided_slice %2 {offsets = [0, 4, 0], sizes = [1, 1, 1], strides = [1, 1, 1]} : vector<1x8x1xf32> to vector<1x1x1xf32>
    %37 = vector.broadcast %36 : vector<1x1x1xf32> to vector<1x8x1xf32>
    %38 = arith.mulf %35, %37 : vector<1x8x1xf32>
    %39 = arith.addf %32, %38 : vector<1x8x1xf32>
    %c5 = arith.constant 5 : index
    %c0_17 = arith.constant 0 : index
    %c0_18 = arith.constant 0 : index
    %40 = vector.load %arg3[%c5, %c0_17, %c0_18] : memref<36x8x1xf32, #tpu.memory_space<vmem>>, vector<1x8x1xf32>
    %41 = vector.shape_cast %40 : vector<1x8x1xf32> to vector<8x1xf32>
    %42 = vector.shape_cast %41 : vector<8x1xf32> to vector<1x8x1xf32>
    %43 = vector.extract_strided_slice %2 {offsets = [0, 5, 0], sizes = [1, 1, 1], strides = [1, 1, 1]} : vector<1x8x1xf32> to vector<1x1x1xf32>
    %44 = vector.broadcast %43 : vector<1x1x1xf32> to vector<1x8x1xf32>
    %45 = arith.mulf %42, %44 : vector<1x8x1xf32>
    %46 = arith.addf %39, %45 : vector<1x8x1xf32>
    %c6 = arith.constant 6 : index
    %c0_19 = arith.constant 0 : index
    %c0_20 = arith.constant 0 : index
    %47 = vector.load %arg3[%c6, %c0_19, %c0_20] : memref<36x8x1xf32, #tpu.memory_space<vmem>>, vector<1x8x1xf32>
    %48 = vector.shape_cast %47 : vector<1x8x1xf32> to vector<8x1xf32>
    %49 = vector.shape_cast %48 : vector<8x1xf32> to vector<1x8x1xf32>
    %50 = vector.extract_strided_slice %2 {offsets = [0, 6, 0], sizes = [1, 1, 1], strides = [1, 1, 1]} : vector<1x8x1xf32> to vector<1x1x1xf32>
    %51 = vector.broadcast %50 : vector<1x1x1xf32> to vector<1x8x1xf32>
    %52 = arith.mulf %49, %51 : vector<1x8x1xf32>
    %53 = arith.addf %46, %52 : vector<1x8x1xf32>
    %c7 = arith.constant 7 : index
    %c0_21 = arith.constant 0 : index
    %c0_22 = arith.constant 0 : index
    %54 = vector.load %arg3[%c7, %c0_21, %c0_22] : memref<36x8x1xf32, #tpu.memory_space<vmem>>, vector<1x8x1xf32>
    %55 = vector.shape_cast %54 : vector<1x8x1xf32> to vector<8x1xf32>
    %56 = vector.shape_cast %55 : vector<8x1xf32> to vector<1x8x1xf32>
    %57 = vector.extract_strided_slice %2 {offsets = [0, 7, 0], sizes = [1, 1, 1], strides = [1, 1, 1]} : vector<1x8x1xf32> to vector<1x1x1xf32>
    %58 = vector.broadcast %57 : vector<1x1x1xf32> to vector<1x8x1xf32>
    %59 = arith.mulf %56, %58 : vector<1x8x1xf32>
    %60 = arith.addf %53, %59 : vector<1x8x1xf32>
    %c32 = arith.constant 32 : index
    %c0_23 = arith.constant 0 : index
    %c0_24 = arith.constant 0 : index
    %61 = vector.load %arg3[%c32, %c0_23, %c0_24] : memref<36x8x1xf32, #tpu.memory_space<vmem>>, vector<1x8x1xf32>
    %62 = vector.shape_cast %61 : vector<1x8x1xf32> to vector<8x1xf32>
    %63 = vector.shape_cast %62 : vector<8x1xf32> to vector<1x8x1xf32>
    %64 = arith.addf %60, %63 : vector<1x8x1xf32>
    %cst_25 = arith.constant 0.000000e+00 : f32
    %65 = vector.broadcast %cst_25 : f32 to vector<1x8x1xf32>
    %66 = arith.maximumf %64, %65 : vector<1x8x1xf32>
    %c8 = arith.constant 8 : index
    %c0_26 = arith.constant 0 : index
    %c0_27 = arith.constant 0 : index
    %67 = vector.load %arg3[%c8, %c0_26, %c0_27] : memref<36x8x1xf32, #tpu.memory_space<vmem>>, vector<1x8x1xf32>
    %68 = vector.shape_cast %67 : vector<1x8x1xf32> to vector<8x1xf32>
    %69 = vector.shape_cast %68 : vector<8x1xf32> to vector<1x8x1xf32>
    %70 = vector.extract_strided_slice %5 {offsets = [0, 0, 0], sizes = [1, 1, 1], strides = [1, 1, 1]} : vector<1x8x1xf32> to vector<1x1x1xf32>
    %71 = vector.broadcast %70 : vector<1x1x1xf32> to vector<1x8x1xf32>
    %72 = arith.mulf %69, %71 : vector<1x8x1xf32>
    %c9 = arith.constant 9 : index
    %c0_28 = arith.constant 0 : index
    %c0_29 = arith.constant 0 : index
    %73 = vector.load %arg3[%c9, %c0_28, %c0_29] : memref<36x8x1xf32, #tpu.memory_space<vmem>>, vector<1x8x1xf32>
    %74 = vector.shape_cast %73 : vector<1x8x1xf32> to vector<8x1xf32>
    %75 = vector.shape_cast %74 : vector<8x1xf32> to vector<1x8x1xf32>
    %76 = vector.extract_strided_slice %5 {offsets = [0, 1, 0], sizes = [1, 1, 1], strides = [1, 1, 1]} : vector<1x8x1xf32> to vector<1x1x1xf32>
    %77 = vector.broadcast %76 : vector<1x1x1xf32> to vector<1x8x1xf32>
    %78 = arith.mulf %75, %77 : vector<1x8x1xf32>
    %79 = arith.addf %72, %78 : vector<1x8x1xf32>
    %c10 = arith.constant 10 : index
    %c0_30 = arith.constant 0 : index
    %c0_31 = arith.constant 0 : index
    %80 = vector.load %arg3[%c10, %c0_30, %c0_31] : memref<36x8x1xf32, #tpu.memory_space<vmem>>, vector<1x8x1xf32>
    %81 = vector.shape_cast %80 : vector<1x8x1xf32> to vector<8x1xf32>
    %82 = vector.shape_cast %81 : vector<8x1xf32> to vector<1x8x1xf32>
    %83 = vector.extract_strided_slice %5 {offsets = [0, 2, 0], sizes = [1, 1, 1], strides = [1, 1, 1]} : vector<1x8x1xf32> to vector<1x1x1xf32>
    %84 = vector.broadcast %83 : vector<1x1x1xf32> to vector<1x8x1xf32>
    %85 = arith.mulf %82, %84 : vector<1x8x1xf32>
    %86 = arith.addf %79, %85 : vector<1x8x1xf32>
    %c11 = arith.constant 11 : index
    %c0_32 = arith.constant 0 : index
    %c0_33 = arith.constant 0 : index
    %87 = vector.load %arg3[%c11, %c0_32, %c0_33] : memref<36x8x1xf32, #tpu.memory_space<vmem>>, vector<1x8x1xf32>
    %88 = vector.shape_cast %87 : vector<1x8x1xf32> to vector<8x1xf32>
    %89 = vector.shape_cast %88 : vector<8x1xf32> to vector<1x8x1xf32>
    %90 = vector.extract_strided_slice %5 {offsets = [0, 3, 0], sizes = [1, 1, 1], strides = [1, 1, 1]} : vector<1x8x1xf32> to vector<1x1x1xf32>
    %91 = vector.broadcast %90 : vector<1x1x1xf32> to vector<1x8x1xf32>
    %92 = arith.mulf %89, %91 : vector<1x8x1xf32>
    %93 = arith.addf %86, %92 : vector<1x8x1xf32>
    %c12 = arith.constant 12 : index
    %c0_34 = arith.constant 0 : index
    %c0_35 = arith.constant 0 : index
    %94 = vector.load %arg3[%c12, %c0_34, %c0_35] : memref<36x8x1xf32, #tpu.memory_space<vmem>>, vector<1x8x1xf32>
    %95 = vector.shape_cast %94 : vector<1x8x1xf32> to vector<8x1xf32>
    %96 = vector.shape_cast %95 : vector<8x1xf32> to vector<1x8x1xf32>
    %97 = vector.extract_strided_slice %5 {offsets = [0, 4, 0], sizes = [1, 1, 1], strides = [1, 1, 1]} : vector<1x8x1xf32> to vector<1x1x1xf32>
    %98 = vector.broadcast %97 : vector<1x1x1xf32> to vector<1x8x1xf32>
    %99 = arith.mulf %96, %98 : vector<1x8x1xf32>
    %100 = arith.addf %93, %99 : vector<1x8x1xf32>
    %c13 = arith.constant 13 : index
    %c0_36 = arith.constant 0 : index
    %c0_37 = arith.constant 0 : index
    %101 = vector.load %arg3[%c13, %c0_36, %c0_37] : memref<36x8x1xf32, #tpu.memory_space<vmem>>, vector<1x8x1xf32>
    %102 = vector.shape_cast %101 : vector<1x8x1xf32> to vector<8x1xf32>
    %103 = vector.shape_cast %102 : vector<8x1xf32> to vector<1x8x1xf32>
    %104 = vector.extract_strided_slice %5 {offsets = [0, 5, 0], sizes = [1, 1, 1], strides = [1, 1, 1]} : vector<1x8x1xf32> to vector<1x1x1xf32>
    %105 = vector.broadcast %104 : vector<1x1x1xf32> to vector<1x8x1xf32>
    %106 = arith.mulf %103, %105 : vector<1x8x1xf32>
    %107 = arith.addf %100, %106 : vector<1x8x1xf32>
    %c14 = arith.constant 14 : index
    %c0_38 = arith.constant 0 : index
    %c0_39 = arith.constant 0 : index
    %108 = vector.load %arg3[%c14, %c0_38, %c0_39] : memref<36x8x1xf32, #tpu.memory_space<vmem>>, vector<1x8x1xf32>
    %109 = vector.shape_cast %108 : vector<1x8x1xf32> to vector<8x1xf32>
    %110 = vector.shape_cast %109 : vector<8x1xf32> to vector<1x8x1xf32>
    %111 = vector.extract_strided_slice %5 {offsets = [0, 6, 0], sizes = [1, 1, 1], strides = [1, 1, 1]} : vector<1x8x1xf32> to vector<1x1x1xf32>
    %112 = vector.broadcast %111 : vector<1x1x1xf32> to vector<1x8x1xf32>
    %113 = arith.mulf %110, %112 : vector<1x8x1xf32>
    %114 = arith.addf %107, %113 : vector<1x8x1xf32>
    %c15 = arith.constant 15 : index
    %c0_40 = arith.constant 0 : index
    %c0_41 = arith.constant 0 : index
    %115 = vector.load %arg3[%c15, %c0_40, %c0_41] : memref<36x8x1xf32, #tpu.memory_space<vmem>>, vector<1x8x1xf32>
    %116 = vector.shape_cast %115 : vector<1x8x1xf32> to vector<8x1xf32>
    %117 = vector.shape_cast %116 : vector<8x1xf32> to vector<1x8x1xf32>
    %118 = vector.extract_strided_slice %5 {offsets = [0, 7, 0], sizes = [1, 1, 1], strides = [1, 1, 1]} : vector<1x8x1xf32> to vector<1x1x1xf32>
    %119 = vector.broadcast %118 : vector<1x1x1xf32> to vector<1x8x1xf32>
    %120 = arith.mulf %117, %119 : vector<1x8x1xf32>
    %121 = arith.addf %114, %120 : vector<1x8x1xf32>
    %c33 = arith.constant 33 : index
    %c0_42 = arith.constant 0 : index
    %c0_43 = arith.constant 0 : index
    %122 = vector.load %arg3[%c33, %c0_42, %c0_43] : memref<36x8x1xf32, #tpu.memory_space<vmem>>, vector<1x8x1xf32>
    %123 = vector.shape_cast %122 : vector<1x8x1xf32> to vector<8x1xf32>
    %124 = vector.shape_cast %123 : vector<8x1xf32> to vector<1x8x1xf32>
    %125 = arith.addf %121, %124 : vector<1x8x1xf32>
    %cst_44 = arith.constant 0.000000e+00 : f32
    %126 = vector.broadcast %cst_44 : f32 to vector<1x8x1xf32>
    %127 = arith.maximumf %125, %126 : vector<1x8x1xf32>
    %128 = arith.addf %66, %127 : vector<1x8x1xf32>
    %c16 = arith.constant 16 : index
    %c0_45 = arith.constant 0 : index
    %c0_46 = arith.constant 0 : index
    %129 = vector.load %arg3[%c16, %c0_45, %c0_46] : memref<36x8x1xf32, #tpu.memory_space<vmem>>, vector<1x8x1xf32>
    %130 = vector.shape_cast %129 : vector<1x8x1xf32> to vector<8x1xf32>
    %131 = vector.shape_cast %130 : vector<8x1xf32> to vector<1x8x1xf32>
    %132 = vector.extract_strided_slice %128 {offsets = [0, 0, 0], sizes = [1, 1, 1], strides = [1, 1, 1]} : vector<1x8x1xf32> to vector<1x1x1xf32>
    %133 = vector.broadcast %132 : vector<1x1x1xf32> to vector<1x8x1xf32>
    %134 = arith.mulf %131, %133 : vector<1x8x1xf32>
    %c17 = arith.constant 17 : index
    %c0_47 = arith.constant 0 : index
    %c0_48 = arith.constant 0 : index
    %135 = vector.load %arg3[%c17, %c0_47, %c0_48] : memref<36x8x1xf32, #tpu.memory_space<vmem>>, vector<1x8x1xf32>
    %136 = vector.shape_cast %135 : vector<1x8x1xf32> to vector<8x1xf32>
    %137 = vector.shape_cast %136 : vector<8x1xf32> to vector<1x8x1xf32>
    %138 = vector.extract_strided_slice %128 {offsets = [0, 1, 0], sizes = [1, 1, 1], strides = [1, 1, 1]} : vector<1x8x1xf32> to vector<1x1x1xf32>
    %139 = vector.broadcast %138 : vector<1x1x1xf32> to vector<1x8x1xf32>
    %140 = arith.mulf %137, %139 : vector<1x8x1xf32>
    %141 = arith.addf %134, %140 : vector<1x8x1xf32>
    %c18 = arith.constant 18 : index
    %c0_49 = arith.constant 0 : index
    %c0_50 = arith.constant 0 : index
    %142 = vector.load %arg3[%c18, %c0_49, %c0_50] : memref<36x8x1xf32, #tpu.memory_space<vmem>>, vector<1x8x1xf32>
    %143 = vector.shape_cast %142 : vector<1x8x1xf32> to vector<8x1xf32>
    %144 = vector.shape_cast %143 : vector<8x1xf32> to vector<1x8x1xf32>
    %145 = vector.extract_strided_slice %128 {offsets = [0, 2, 0], sizes = [1, 1, 1], strides = [1, 1, 1]} : vector<1x8x1xf32> to vector<1x1x1xf32>
    %146 = vector.broadcast %145 : vector<1x1x1xf32> to vector<1x8x1xf32>
    %147 = arith.mulf %144, %146 : vector<1x8x1xf32>
    %148 = arith.addf %141, %147 : vector<1x8x1xf32>
    %c19 = arith.constant 19 : index
    %c0_51 = arith.constant 0 : index
    %c0_52 = arith.constant 0 : index
    %149 = vector.load %arg3[%c19, %c0_51, %c0_52] : memref<36x8x1xf32, #tpu.memory_space<vmem>>, vector<1x8x1xf32>
    %150 = vector.shape_cast %149 : vector<1x8x1xf32> to vector<8x1xf32>
    %151 = vector.shape_cast %150 : vector<8x1xf32> to vector<1x8x1xf32>
    %152 = vector.extract_strided_slice %128 {offsets = [0, 3, 0], sizes = [1, 1, 1], strides = [1, 1, 1]} : vector<1x8x1xf32> to vector<1x1x1xf32>
    %153 = vector.broadcast %152 : vector<1x1x1xf32> to vector<1x8x1xf32>
    %154 = arith.mulf %151, %153 : vector<1x8x1xf32>
    %155 = arith.addf %148, %154 : vector<1x8x1xf32>
    %c20 = arith.constant 20 : index
    %c0_53 = arith.constant 0 : index
    %c0_54 = arith.constant 0 : index
    %156 = vector.load %arg3[%c20, %c0_53, %c0_54] : memref<36x8x1xf32, #tpu.memory_space<vmem>>, vector<1x8x1xf32>
    %157 = vector.shape_cast %156 : vector<1x8x1xf32> to vector<8x1xf32>
    %158 = vector.shape_cast %157 : vector<8x1xf32> to vector<1x8x1xf32>
    %159 = vector.extract_strided_slice %128 {offsets = [0, 4, 0], sizes = [1, 1, 1], strides = [1, 1, 1]} : vector<1x8x1xf32> to vector<1x1x1xf32>
    %160 = vector.broadcast %159 : vector<1x1x1xf32> to vector<1x8x1xf32>
    %161 = arith.mulf %158, %160 : vector<1x8x1xf32>
    %162 = arith.addf %155, %161 : vector<1x8x1xf32>
    %c21 = arith.constant 21 : index
    %c0_55 = arith.constant 0 : index
    %c0_56 = arith.constant 0 : index
    %163 = vector.load %arg3[%c21, %c0_55, %c0_56] : memref<36x8x1xf32, #tpu.memory_space<vmem>>, vector<1x8x1xf32>
    %164 = vector.shape_cast %163 : vector<1x8x1xf32> to vector<8x1xf32>
    %165 = vector.shape_cast %164 : vector<8x1xf32> to vector<1x8x1xf32>
    %166 = vector.extract_strided_slice %128 {offsets = [0, 5, 0], sizes = [1, 1, 1], strides = [1, 1, 1]} : vector<1x8x1xf32> to vector<1x1x1xf32>
    %167 = vector.broadcast %166 : vector<1x1x1xf32> to vector<1x8x1xf32>
    %168 = arith.mulf %165, %167 : vector<1x8x1xf32>
    %169 = arith.addf %162, %168 : vector<1x8x1xf32>
    %c22 = arith.constant 22 : index
    %c0_57 = arith.constant 0 : index
    %c0_58 = arith.constant 0 : index
    %170 = vector.load %arg3[%c22, %c0_57, %c0_58] : memref<36x8x1xf32, #tpu.memory_space<vmem>>, vector<1x8x1xf32>
    %171 = vector.shape_cast %170 : vector<1x8x1xf32> to vector<8x1xf32>
    %172 = vector.shape_cast %171 : vector<8x1xf32> to vector<1x8x1xf32>
    %173 = vector.extract_strided_slice %128 {offsets = [0, 6, 0], sizes = [1, 1, 1], strides = [1, 1, 1]} : vector<1x8x1xf32> to vector<1x1x1xf32>
    %174 = vector.broadcast %173 : vector<1x1x1xf32> to vector<1x8x1xf32>
    %175 = arith.mulf %172, %174 : vector<1x8x1xf32>
    %176 = arith.addf %169, %175 : vector<1x8x1xf32>
    %c23 = arith.constant 23 : index
    %c0_59 = arith.constant 0 : index
    %c0_60 = arith.constant 0 : index
    %177 = vector.load %arg3[%c23, %c0_59, %c0_60] : memref<36x8x1xf32, #tpu.memory_space<vmem>>, vector<1x8x1xf32>
    %178 = vector.shape_cast %177 : vector<1x8x1xf32> to vector<8x1xf32>
    %179 = vector.shape_cast %178 : vector<8x1xf32> to vector<1x8x1xf32>
    %180 = vector.extract_strided_slice %128 {offsets = [0, 7, 0], sizes = [1, 1, 1], strides = [1, 1, 1]} : vector<1x8x1xf32> to vector<1x1x1xf32>
    %181 = vector.broadcast %180 : vector<1x1x1xf32> to vector<1x8x1xf32>
    %182 = arith.mulf %179, %181 : vector<1x8x1xf32>
    %183 = arith.addf %176, %182 : vector<1x8x1xf32>
    %c34 = arith.constant 34 : index
    %c0_61 = arith.constant 0 : index
    %c0_62 = arith.constant 0 : index
    %184 = vector.load %arg3[%c34, %c0_61, %c0_62] : memref<36x8x1xf32, #tpu.memory_space<vmem>>, vector<1x8x1xf32>
    %185 = vector.shape_cast %184 : vector<1x8x1xf32> to vector<8x1xf32>
    %186 = vector.shape_cast %185 : vector<8x1xf32> to vector<1x8x1xf32>
    %187 = arith.addf %183, %186 : vector<1x8x1xf32>
    %cst_63 = arith.constant dense<0xFF800000> : vector<1x1xf32>
    %188 = vector.multi_reduction <maximumf>, %187, %cst_63 [1] : vector<1x8x1xf32> to vector<1x1xf32>
    %189 = vector.shape_cast %188 : vector<1x1xf32> to vector<1x1x1xf32>
    %190 = vector.broadcast %189 : vector<1x1x1xf32> to vector<1x8x1xf32>
    %191 = arith.subf %187, %190 : vector<1x8x1xf32>
    %192 = math.exp %191 : vector<1x8x1xf32>
    %cst_64 = arith.constant dense<0.000000e+00> : vector<1x1xf32>
    %193 = vector.multi_reduction <add>, %192, %cst_64 [1] : vector<1x8x1xf32> to vector<1x1xf32>
    %194 = vector.shape_cast %193 : vector<1x1xf32> to vector<1x1x1xf32>
    %195 = vector.broadcast %194 : vector<1x1x1xf32> to vector<1x8x1xf32>
    %196 = arith.divf %192, %195 : vector<1x8x1xf32>
    %c35 = arith.constant 35 : index
    %c0_65 = arith.constant 0 : index
    %c0_66 = arith.constant 0 : index
    %197 = vector.load %arg3[%c35, %c0_65, %c0_66] : memref<36x8x1xf32, #tpu.memory_space<vmem>>, vector<1x8x1xf32>
    %198 = vector.shape_cast %197 : vector<1x8x1xf32> to vector<8x1xf32>
    %199 = vector.shape_cast %198 : vector<8x1xf32> to vector<1x8x1xf32>
    %c24 = arith.constant 24 : index
    %c0_67 = arith.constant 0 : index
    %c0_68 = arith.constant 0 : index
    %200 = vector.load %arg3[%c24, %c0_67, %c0_68] : memref<36x8x1xf32, #tpu.memory_space<vmem>>, vector<1x8x1xf32>
    %201 = vector.shape_cast %200 : vector<1x8x1xf32> to vector<8x1xf32>
    %202 = vector.shape_cast %201 : vector<8x1xf32> to vector<1x8x1xf32>
    %c0_69 = arith.constant 0 : index
    %c0_70 = arith.constant 0 : index
    %c0_71 = arith.constant 0 : index
    %203 = vector.load %arg2[%c0_69, %c0_70, %c0_71] : memref<1x8x256xf32, #tpu.memory_space<vmem>>, vector<1x1x256xf32>
    %204 = vector.broadcast %202 : vector<1x8x1xf32> to vector<1x8x256xf32>
    %205 = vector.broadcast %203 : vector<1x1x256xf32> to vector<1x8x256xf32>
    %206 = arith.mulf %204, %205 : vector<1x8x256xf32>
    %207 = vector.broadcast %199 : vector<1x8x1xf32> to vector<1x8x256xf32>
    %208 = arith.addf %207, %206 : vector<1x8x256xf32>
    %c25 = arith.constant 25 : index
    %c0_72 = arith.constant 0 : index
    %c0_73 = arith.constant 0 : index
    %209 = vector.load %arg3[%c25, %c0_72, %c0_73] : memref<36x8x1xf32, #tpu.memory_space<vmem>>, vector<1x8x1xf32>
    %210 = vector.shape_cast %209 : vector<1x8x1xf32> to vector<8x1xf32>
    %211 = vector.shape_cast %210 : vector<8x1xf32> to vector<1x8x1xf32>
    %c0_74 = arith.constant 0 : index
    %c1_75 = arith.constant 1 : index
    %c0_76 = arith.constant 0 : index
    %212 = vector.load %arg2[%c0_74, %c1_75, %c0_76] : memref<1x8x256xf32, #tpu.memory_space<vmem>>, vector<1x1x256xf32>
    %213 = vector.broadcast %211 : vector<1x8x1xf32> to vector<1x8x256xf32>
    %214 = vector.broadcast %212 : vector<1x1x256xf32> to vector<1x8x256xf32>
    %215 = arith.mulf %213, %214 : vector<1x8x256xf32>
    %216 = arith.addf %208, %215 : vector<1x8x256xf32>
    %c26 = arith.constant 26 : index
    %c0_77 = arith.constant 0 : index
    %c0_78 = arith.constant 0 : index
    %217 = vector.load %arg3[%c26, %c0_77, %c0_78] : memref<36x8x1xf32, #tpu.memory_space<vmem>>, vector<1x8x1xf32>
    %218 = vector.shape_cast %217 : vector<1x8x1xf32> to vector<8x1xf32>
    %219 = vector.shape_cast %218 : vector<8x1xf32> to vector<1x8x1xf32>
    %c0_79 = arith.constant 0 : index
    %c2_80 = arith.constant 2 : index
    %c0_81 = arith.constant 0 : index
    %220 = vector.load %arg2[%c0_79, %c2_80, %c0_81] : memref<1x8x256xf32, #tpu.memory_space<vmem>>, vector<1x1x256xf32>
    %221 = vector.broadcast %219 : vector<1x8x1xf32> to vector<1x8x256xf32>
    %222 = vector.broadcast %220 : vector<1x1x256xf32> to vector<1x8x256xf32>
    %223 = arith.mulf %221, %222 : vector<1x8x256xf32>
    %224 = arith.addf %216, %223 : vector<1x8x256xf32>
    %c27 = arith.constant 27 : index
    %c0_82 = arith.constant 0 : index
    %c0_83 = arith.constant 0 : index
    %225 = vector.load %arg3[%c27, %c0_82, %c0_83] : memref<36x8x1xf32, #tpu.memory_space<vmem>>, vector<1x8x1xf32>
    %226 = vector.shape_cast %225 : vector<1x8x1xf32> to vector<8x1xf32>
    %227 = vector.shape_cast %226 : vector<8x1xf32> to vector<1x8x1xf32>
    %c0_84 = arith.constant 0 : index
    %c3_85 = arith.constant 3 : index
    %c0_86 = arith.constant 0 : index
    %228 = vector.load %arg2[%c0_84, %c3_85, %c0_86] : memref<1x8x256xf32, #tpu.memory_space<vmem>>, vector<1x1x256xf32>
    %229 = vector.broadcast %227 : vector<1x8x1xf32> to vector<1x8x256xf32>
    %230 = vector.broadcast %228 : vector<1x1x256xf32> to vector<1x8x256xf32>
    %231 = arith.mulf %229, %230 : vector<1x8x256xf32>
    %232 = arith.addf %224, %231 : vector<1x8x256xf32>
    %c28 = arith.constant 28 : index
    %c0_87 = arith.constant 0 : index
    %c0_88 = arith.constant 0 : index
    %233 = vector.load %arg3[%c28, %c0_87, %c0_88] : memref<36x8x1xf32, #tpu.memory_space<vmem>>, vector<1x8x1xf32>
    %234 = vector.shape_cast %233 : vector<1x8x1xf32> to vector<8x1xf32>
    %235 = vector.shape_cast %234 : vector<8x1xf32> to vector<1x8x1xf32>
    %c0_89 = arith.constant 0 : index
    %c4_90 = arith.constant 4 : index
    %c0_91 = arith.constant 0 : index
    %236 = vector.load %arg2[%c0_89, %c4_90, %c0_91] : memref<1x8x256xf32, #tpu.memory_space<vmem>>, vector<1x1x256xf32>
    %237 = vector.broadcast %235 : vector<1x8x1xf32> to vector<1x8x256xf32>
    %238 = vector.broadcast %236 : vector<1x1x256xf32> to vector<1x8x256xf32>
    %239 = arith.mulf %237, %238 : vector<1x8x256xf32>
    %240 = arith.addf %232, %239 : vector<1x8x256xf32>
    %c29 = arith.constant 29 : index
    %c0_92 = arith.constant 0 : index
    %c0_93 = arith.constant 0 : index
    %241 = vector.load %arg3[%c29, %c0_92, %c0_93] : memref<36x8x1xf32, #tpu.memory_space<vmem>>, vector<1x8x1xf32>
    %242 = vector.shape_cast %241 : vector<1x8x1xf32> to vector<8x1xf32>
    %243 = vector.shape_cast %242 : vector<8x1xf32> to vector<1x8x1xf32>
    %c0_94 = arith.constant 0 : index
    %c5_95 = arith.constant 5 : index
    %c0_96 = arith.constant 0 : index
    %244 = vector.load %arg2[%c0_94, %c5_95, %c0_96] : memref<1x8x256xf32, #tpu.memory_space<vmem>>, vector<1x1x256xf32>
    %245 = vector.broadcast %243 : vector<1x8x1xf32> to vector<1x8x256xf32>
    %246 = vector.broadcast %244 : vector<1x1x256xf32> to vector<1x8x256xf32>
    %247 = arith.mulf %245, %246 : vector<1x8x256xf32>
    %248 = arith.addf %240, %247 : vector<1x8x256xf32>
    %c30 = arith.constant 30 : index
    %c0_97 = arith.constant 0 : index
    %c0_98 = arith.constant 0 : index
    %249 = vector.load %arg3[%c30, %c0_97, %c0_98] : memref<36x8x1xf32, #tpu.memory_space<vmem>>, vector<1x8x1xf32>
    %250 = vector.shape_cast %249 : vector<1x8x1xf32> to vector<8x1xf32>
    %251 = vector.shape_cast %250 : vector<8x1xf32> to vector<1x8x1xf32>
    %c0_99 = arith.constant 0 : index
    %c6_100 = arith.constant 6 : index
    %c0_101 = arith.constant 0 : index
    %252 = vector.load %arg2[%c0_99, %c6_100, %c0_101] : memref<1x8x256xf32, #tpu.memory_space<vmem>>, vector<1x1x256xf32>
    %253 = vector.broadcast %251 : vector<1x8x1xf32> to vector<1x8x256xf32>
    %254 = vector.broadcast %252 : vector<1x1x256xf32> to vector<1x8x256xf32>
    %255 = arith.mulf %253, %254 : vector<1x8x256xf32>
    %256 = arith.addf %248, %255 : vector<1x8x256xf32>
    %c31 = arith.constant 31 : index
    %c0_102 = arith.constant 0 : index
    %c0_103 = arith.constant 0 : index
    %257 = vector.load %arg3[%c31, %c0_102, %c0_103] : memref<36x8x1xf32, #tpu.memory_space<vmem>>, vector<1x8x1xf32>
    %258 = vector.shape_cast %257 : vector<1x8x1xf32> to vector<8x1xf32>
    %259 = vector.shape_cast %258 : vector<8x1xf32> to vector<1x8x1xf32>
    %c0_104 = arith.constant 0 : index
    %c7_105 = arith.constant 7 : index
    %c0_106 = arith.constant 0 : index
    %260 = vector.load %arg2[%c0_104, %c7_105, %c0_106] : memref<1x8x256xf32, #tpu.memory_space<vmem>>, vector<1x1x256xf32>
    %261 = vector.broadcast %259 : vector<1x8x1xf32> to vector<1x8x256xf32>
    %262 = vector.broadcast %260 : vector<1x1x256xf32> to vector<1x8x256xf32>
    %263 = arith.mulf %261, %262 : vector<1x8x256xf32>
    %264 = arith.addf %256, %263 : vector<1x8x256xf32>
    %cst_107 = arith.constant 0.000000e+00 : f32
    %265 = vector.broadcast %cst_107 : f32 to vector<1x8x256xf32>
    %266 = arith.maximumf %264, %265 : vector<1x8x256xf32>
    %c0_108 = arith.constant 0 : index
    %c0_109 = arith.constant 0 : index
    %c0_110 = arith.constant 0 : index
    %267 = vector.load %arg1[%c0_108, %c0_109, %c0_110] : memref<1x8x256xf32, #tpu.memory_space<vmem>>, vector<1x8x256xf32>
    %268 = vector.broadcast %196 : vector<1x8x1xf32> to vector<1x8x256xf32>
    %269 = arith.mulf %266, %268 : vector<1x8x256xf32>
    %270 = arith.addf %267, %269 : vector<1x8x256xf32>
    %c0_111 = arith.constant 0 : index
    %c0_112 = arith.constant 0 : index
    %c0_113 = arith.constant 0 : index
    %271 = vector.load %arg4[%c0_111, %c0_112, %c0_113] : memref<1x8x256xf32, #tpu.memory_space<vmem>>, vector<1x8x256xf32>
    tpu.vector_store %arg4[%c0_111, %c0_112, %c0_113], %270 {strides = array<i32>} : memref<1x8x256xf32, #tpu.memory_space<vmem>>, vector<1x8x256xf32>,
    return
  }
  func.func @transform_0(%arg0: i32) -> (i32, i32, i32) {
    %c0_i32 = arith.constant 0 : i32
    %c0_i32_0 = arith.constant 0 : i32
    %c0_i32_1 = arith.constant 0 : i32
    return %arg0, %c0_i32, %c0_i32_0 : i32, i32, i32
  }
  func.func @transform_1(%arg0: i32) -> (i32, i32, i32) {
    %c0_i32 = arith.constant 0 : i32
    %c0_i32_0 = arith.constant 0 : i32
    %c0_i32_1 = arith.constant 0 : i32
    return %arg0, %c0_i32, %c0_i32_0 : i32, i32, i32
  }
  func.func @transform_2(%arg0: i32) -> (i32, i32, i32) {
    %c0_i32 = arith.constant 0 : i32
    %c0_i32_0 = arith.constant 0 : i32
    %c0_i32_1 = arith.constant 0 : i32
    %c0_i32_2 = arith.constant 0 : i32
    return %c0_i32, %c0_i32_0, %c0_i32_1 : i32, i32, i32
  }
  func.func @transform_3(%arg0: i32) -> (i32, i32, i32) {
    %c0_i32 = arith.constant 0 : i32
    %c0_i32_0 = arith.constant 0 : i32
    %c0_i32_1 = arith.constant 0 : i32
    return %arg0, %c0_i32, %c0_i32_0 : i32, i32, i32
  }
}

</mosaic_0001>

<bundles_post_ra>
// kernel: tpu_custom_call.1
= control target key start
LH: loop header
LB: loop body
LE: loop exit
PB: predicated region body
PF: predicated region fallthrough
CT: control target
= control target key end

     0   :  { %8 = vsyncpa [#allocation3], 0  ;;  %s1334_s0 = inlined_call_operand.hbm [shape: f32[2,8,256], index: 0, kind: input, shape index: {}, may-alias: {0,3}]   ;;  %s1335_s1 = inlined_call_operand.vmem [shape: f32[2,8,256], index: 1, kind: input, shape index: {}]   ;;  %s1336_s2 = inlined_call_operand.vmem [shape: f32[36,8,1], index: 2, kind: input, shape index: {}]   ;;  %s1337_s3 = inlined_call_operand.hbm [shape: f32[2,8,256], index: 3, kind: output, shape index: {}, may-alias: {0,3}]  }
   0x1   :  { %10 = vsyncpa [#allocation3 + $0x1], 0 }
   0x2   :  { %11 = vsyncpa [#allocation4], 0 }
   0x3   :  { %13 = vsyncpa [#allocation4 + $0x1], 0  ;;  %s980_s12 = smov 0   ;;  %s982_s13 = smov 0  }
   0x4   :  { %s984_s14 = smov 0   ;;  %s986_s15 = smov 0  }
   0x5 LB: > { %s1001_s16 = sadd.s32 4294967295, %s955_s15   ;;  %s745_s17 = sadd.s32 4294967294, %s955_s15   ;;  %s955_s15 = sphi %s986_s15, %s1352_s15   ;;  %s951_s14 = sphi %s984_s14, %s1351_s14   ;;  %s947_s13 = sphi %s982_s13, %s1350_s13   ;;  %s943_s12 = sphi %s980_s12, %s1349_s12  }
   0x6   : > { %s1005_s18 = sadd.s32 1, %s955_s15   ;;  %s26_s19 = sadd.s32 1, %s951_s14 }
   0x7   : > { %s23_s20 = ssub.s32 %s955_s15, %s1005_s18  ;;  %p33_p0 = scmp.ne.s32.totalorder %s951_s14, %s947_s13 }
   0x8   : > { %p24_p1 = scmp.eq.s32.totalorder %s23_s20, 0  ;;  %p34_p2 = scmp.eq.s32.totalorder %s955_s15, 0 }
   0x9   : > { %p39_p3 = scmp.ne.s32.totalorder %s947_s13, %s943_s12  ;;  %p40_p4 = scmp.eq.s32.totalorder %s1001_s16, 0 }
   0xa   : > { %s1017_s21 = scalar_select %p24_p1, %s951_s14, %s26_s19  }
   0xb   : > { %p1019_p5 = por %p34_p2, %p33_p0  ;;  %p1023_p6 = por %p40_p4, %p39_p3 }
   0xc   : > { %p110_p7 = scmp.eq.s32.totalorder %s1001_s16, 1  ;;  %p116_p8 = scmp.eq.s32.totalorder %s745_s17, 1 }
   0xd   : > { %p818_p10 = scmp.lt.s32.totalorder %s955_s15, 2  ;;  %s139_s26 = sand.u32 1, %s951_s14  }
   0xe   : > { %p1030_p11 = por %p110_p7, %p33_p0  ;;  %p1034_p12 = por %p116_p8, %p39_p3 }
   0xf   : > { %s803_s27 = sshll.u32 %s955_s15, 8  ;;  %s748_s28 = sshll.u32 %s139_s26, 4 }
  0x10   : > { %s1341_s24 = scalar_select %p1030_p11, 1, 0 }
  0x11   : > { %s1342_s25 = scalar_select %p1034_p12, 1, 0 }
  0x12   : > { %s1043_s4 = scalar_lea.hbm %s1334_s0, %s803_s27  ;;  %s143_s5 = scalar_lea.vmem [#allocation2], %s748_s28 }
  0x13   : > { %s151_s6 = sshll.u32 %s143_s5, 4  ;;  %p1047_p13 = pnand %p818_p10, %p1019_p5  ;;  %s1051_s6 = int_to_ptr.vmem [resolvable:$true] %s151_s6 }
  0x14   : > { %s140_s8 = scalar_lea.sflag [#allocation3], %s139_s26  ;;  %s859_s9 = scalar_lea.hbm %s1043_s4, 256 }
  0x15   : > { %p860_p2 = scmp.ne.s32.totalorder %s1043_s4, %s859_s9  ;;  %p861_p3 = pneg %p1047_p13 }
  0x16   : > { %s864_s17 = scalar_lea.hbm %s1334_s0, 512  ;;  %p865_p5 = scmp.lt.u32.totalorder %s1043_s4, %s1334_s0 }
  0x17   : > { %p862_p4 = pnand %p861_p3, %p860_p2  ;;  %p866_p8 = scmp.lt.u32.totalorder %s864_s17, %s859_s9 }
  0x18   : > { %p868_p9 = scmp.lt.u32.totalorder %s859_s9, %s1043_s4 }
  0x19   : > { %p863_p7 = pneg %p862_p4  ;;  %p867_p10 = por %p866_p8, %p865_p5 }
  0x1b   : > { %p869_p0 = por %p868_p9, %p867_p10 }
  0x1d   : > { %p870_p1 = pnand %p869_p0, %p863_p7 }
  0x1f   : > { %873 = shalt.err (!%p870_p1)
}
  0x20   : > { %s874_s22 = scalar_lea.vmem %s1051_s6, 256  ;;  %s957_s26 = smov [#allocation2]  }
  0x21   : > { %p875_p2 = scmp.ne.s32.totalorder %s1051_s6, %s874_s22  ;;  %s879_s27 = sshll.u32 %s957_s26, 4  ;;  %s880_s27 = int_to_ptr.vmem [resolvable:$false] %s879_s27 }
  0x22   : > { %s881_s28 = scalar_lea.vmem %s880_s27, 512  ;;  %p882_p11 = scmp.lt.s32.totalorder %s1051_s6, %s880_s27 }
  0x23   : > { %p877_p4 = pnand %p875_p2, %p861_p3  ;;  %p883_p5 = scmp.lt.s32.totalorder %s881_s28, %s874_s22 }
  0x25   : > { %p878_p12 = pneg %p877_p4  ;;  %p884_p8 = por %p883_p5, %p882_p11 }
  0x27   : > { %p885_p9 = pnand %p884_p8, %p878_p12 }
  0x29   : > { %888 = shalt.err (!%p885_p9)
}
  0x2a   : > { %813 = dma.hbm_to_vmem [thread:$0]  (!%p1047_p13), %s1043_s4, 256, %s1051_s6, %s140_s8  }
  0x2b   : > { %p1344_p0 = scmp.lt.s32.totalorder %s955_s15, 3  ;;  %p1345_p1 = scmp.ge.s32.totalorder %s955_s15, 1 }
  0x2d   : > { %p165_p3 = pnand %p1345_p1, %p1344_p0 }
  0x2e   : > { %s1085_s29 = sand.u32 (!%p165_p3), 1, %s947_s13  }
  0x2f   : > { %168 = sbr.rel (%p165_p3) target bundleno = 450 (0x1c2), region = 32  ;;  %s752_s30 = sshll.u32 (!%p165_p3), %s1085_s29, 4 }
  0x30   : > { %s171_s5 = scalar_lea.sflag (!%p165_p3), [#allocation3], %s1085_s29  ;;  %s174_s7 = scalar_lea.vmem (!%p165_p3), [#allocation2], %s752_s30 }
  0x36   : > { %934 = dma.done.wait (%p1023_p6), %s171_s5, 256  }
  0x37   : > { %936 = vsyncadd (%p1023_p6), %s171_s5, 4294967040  ;;  %p202_p11 = scmp.lt.s32.totalorder %s1001_s16, 1  ;;  %v1102_v0 = vld [vmem:[%s174_s7] sm:$0xff]  ;;  %v1104_v1 = vld [vmem:[%s174_s7 + $0x8] sm:$0xff]  ;;  %v958_v7 = vmov 0   ;;  %v218_v16 = vlaneseq  ;;  %vm417_vm0 = vcmask 7168  }
  0x38   : > { %v209_v3 = vadd.f32 %v1104_v1, %v1102_v0  ;;  %v783_v6 = vld [vmem:[%s1336_s2 + $0xc0] sm:$0xff]  ;;  %853 = vset.pattern.permute.xlu1 %v958_v7  ;;  %854 = vset.pattern.permute.xlu0 %v958_v7  ;;  %v784_v8 = vld [vmem:[%s1336_s2 + $0xc8] sm:$0xff]  ;;  %v782_v9 = vld [vmem:[%s1336_s2 + $0x118] sm:$0xff]  ;;  %p1346_p12 = scmp.ne.s32.totalorder %s1341_s24, 0  ;;  %s959_s17 = smov [#allocation5]  }
  0x39   : > { %s203_s4 = scalar_select %p202_p11, %s1001_s16, 1  ;;  %444 = vperm.xlu1 %853, %v783_v6   ;;  %v786_v10 = vld [vmem:[%s1336_s2 + $0xd0] sm:$0xff]  ;;  %v788_v11 = vld [vmem:[%s1336_s2 + $0xd8] sm:$0xff]  ;;  %v790_v12 = vld [vmem:[%s1336_s2 + $0xe0] sm:$0xff]  ;;  %v219_v17 = vshrl.u32 %v218_v16, 7 }
  0x3a   : > { %210 = vadd.xlane.f32.xlu0 %v209_v3  ;;  %v792_v13 = vld [vmem:[%s1336_s2 + $0xe8] sm:$0xff]  ;;  %v794_v14 = vld [vmem:[%s1336_s2 + $0xf0] sm:$0xff]  ;;  %v796_v15 = vld [vmem:[%s1336_s2 + $0xf8] sm:$0xff]  ;;  %s893_s19 = sshll.u32 %s959_s17, 4  ;;  %s894_s19 = int_to_ptr.vmem [resolvable:$false] %s893_s19 }
  0x3b   : > { %s804_s6 = sshll.u32 %s203_s4, 4  ;;  %v1137_v18 = vsub.s32 0, %v219_v17  ;;  %v1139_v19 = vsub.s32 1, %v219_v17  ;;  %v1141_v20 = vsub.s32 2, %v219_v17  ;;  %v1143_v21 = vsub.s32 3, %v219_v17  ;;  %v217_v22 = vld [vmem:[%s1336_s2] sm:$0xff] }
  0x3c   : > { %s1100_s10 = scalar_lea.vmem %s1335_s1, %s804_s6  ;;  %v756_v23 = vld [vmem:[%s1336_s2 + $0x8] sm:$0xff]  ;;  %v1151_v24 = vsub.s32 4, %v219_v17  ;;  %v757_v26 = vld [vmem:[%s1336_s2 + $0x10] sm:$0xff]  ;;  %v1159_v30 = vsub.s32 5, %v219_v17  ;;  %v758_v32 = vld [vmem:[%s1336_s2 + $0x18] sm:$0xff]  ;;  %v1165_v35 = vsub.s32 6, %v219_v17 }
  0x3d   : > { %v212_v2 = vld [vmem:[%s1100_s10] sm:$0xff]  ;;  %v213_v4 = vld [vmem:[%s1100_s10 + $0x8] sm:$0xff]  ;;  %462 = vperm.xlu1 %853, %v782_v9   ;;  %v1180_v46 = vsub.s32 7, %v219_v17  ;;  %v766_v49 = vld [vmem:[%s1336_s2 + $0x50] sm:$0xff]  ;;  %s201_s6 = scalar_lea.vmem [#allocation5], %s752_s30  ;;  %s895_s20 = scalar_lea.vmem %s894_s19, 512 }
  0x3e   : > { %v214_v5 = vadd.f32 %v213_v4, %v212_v2  ;;  %v764_v38 = vld [vmem:[%s1336_s2 + $0x40] sm:$0xff]  ;;  %v765_v39 = vld [vmem:[%s1336_s2 + $0x48] sm:$0xff]  ;;  %v767_v57 = vld [vmem:[%s1336_s2 + $0x58] sm:$0xff]  ;;  %s663_s8 = sshll.u32 %s201_s6, 4  ;;  %s1292_s8 = int_to_ptr.vmem [resolvable:$true] %s663_s8 }
  0x3f   : > { %v759_v41 = vld [vmem:[%s1336_s2 + $0x20] sm:$0xff]  ;;  %v760_v50 = vld [vmem:[%s1336_s2 + $0x28] sm:$0xff]  ;;  %v761_v58 = vld [vmem:[%s1336_s2 + $0x30] sm:$0xff]  ;;  %s889_s30 = scalar_lea.vmem %s1292_s8, 256  ;;  %p896_p10 = scmp.lt.s32.totalorder %s1292_s8, %s894_s19 }
  0x40   : > { %215 = vadd.xlane.f32.xlu0 %v214_v5  ;;  %v768_v3 = vld [vmem:[%s1336_s2 + $0x60] sm:$0xff]  ;;  %v762_v4 = vld [vmem:[%s1336_s2 + $0x38] sm:$0xff]  ;;  %v770_v16 = vld [vmem:[%s1336_s2 + $0x70] sm:$0xff]  ;;  %p890_p6 = scmp.ne.s32.totalorder %s1292_s8, %s889_s30  ;;  %p897_p2 = scmp.lt.s32.totalorder %s895_s20, %s889_s30 }
  0x41   : > { %497 = vperm.xlu1 %853, %v786_v10   ;;  %v769_v10 = vld [vmem:[%s1336_s2 + $0x68] sm:$0xff] }
  0x42   : > { %p891_p13 = pnand %p890_p6, %p1346_p12  ;;  %p898_p4 = por %p897_p2, %p896_p10 }
  0x44   : > { %p892_p7 = pneg %p891_p13 }
  0x45   : > { %521 = vperm.xlu1 %853, %v788_v11  }
  0x46   : > { %p899_p5 = pnand %p898_p4, %p892_p7 }
  0x49   : > { %545 = vperm.xlu1 %853, %v790_v12  }
  0x4d   : > { %569 = vperm.xlu1 %853, %v792_v13  }
  0x51   : > { %593 = vperm.xlu1 %853, %v794_v14  }
  0x55   : > { %617 = vperm.xlu1 %853, %v796_v15  }
  0x56   : > { %473 = vperm.xlu0 %854, %v784_v8  }
  0xc7   : > { %v211_v25 = vpop.xlane.xlu0 %210 }
  0xc8   : > { %v221_v27 = vrot.slane %v211_v25, %v1137_v18  ;;  %v228_v28 = vrot.slane %v211_v25, %v1139_v19  ;;  %v236_v29 = vrot.slane %v211_v25, %v1141_v20  ;;  %v244_v31 = vrot.slane %v211_v25, %v1143_v21 }
  0xc9   : > { %v252_v37 = vrot.slane %v211_v25, %v1151_v24  ;;  %v260_v48 = vrot.slane %v211_v25, %v1159_v30  ;;  %v268_v56 = vrot.slane %v211_v25, %v1165_v35  ;;  %v276_v2 = vrot.slane %v211_v25, %v1180_v46 }
  0xca   : > { %v222_v33 = vmul.f32 %v221_v27, %v217_v22  ;;  %v229_v34 = vmul.f32 %v756_v23, %v228_v28  ;;  %v237_v36 = vmul.f32 %v757_v26, %v236_v29  ;;  %v245_v47 = vmul.f32 %v758_v32, %v244_v31  ;;  %v771_v26 = vld [vmem:[%s1336_s2 + $0x78] sm:$0xff]  ;;  %v763_v31 = vld [vmem:[%s1336_s2 + $0x100] sm:$0xff] }
  0xcb   : > { %v253_v55 = vmul.f32 %v759_v41, %v252_v37  ;;  %v261_v63 = vmul.f32 %v760_v50, %v260_v48  ;;  %v269_v9 = vmul.f32 %v761_v58, %v268_v56  ;;  %v277_v15 = vmul.f32 %v762_v4, %v276_v2  ;;  %v775_v48 = vld [vmem:[%s1336_s2 + $0x90] sm:$0xff] }
  0xcc   : > { %v230_v42 = vadd.f32 %v229_v34, %v222_v33  ;;  %v772_v34 = vld [vmem:[%s1336_s2 + $0x108] sm:$0xff] }
  0xcd   : > { %v216_v40 = vpop.xlane.xlu0 %215 }
  0xce   : > { %v288_v43 = vrot.slane %v216_v40, %v1137_v18  ;;  %v295_v44 = vrot.slane %v216_v40, %v1139_v19  ;;  %v303_v45 = vrot.slane %v216_v40, %v1141_v20  ;;  %v238_v51 = vadd.f32 %v237_v36, %v230_v42  ;;  %v773_v42 = vld [vmem:[%s1336_s2 + $0x80] sm:$0xff] }
  0xcf   : > { %v311_v54 = vrot.slane %v216_v40, %v1143_v21  ;;  %v319_v62 = vrot.slane %v216_v40, %v1151_v24  ;;  %v327_v8 = vrot.slane %v216_v40, %v1159_v30  ;;  %v335_v14 = vrot.slane %v216_v40, %v1165_v35 }
  0xd0   : > { %v289_v52 = vmul.f32 %v764_v38, %v288_v43  ;;  %v296_v53 = vmul.f32 %v765_v39, %v295_v44  ;;  %v246_v59 = vadd.f32 %v245_v47, %v238_v51  ;;  %v304_v61 = vmul.f32 %v766_v49, %v303_v45  ;;  %v774_v43 = vld [vmem:[%s1336_s2 + $0x88] sm:$0xff] }
  0xd1   : > { %v312_v7 = vmul.f32 %v767_v57, %v311_v54  ;;  %v320_v13 = vmul.f32 %v768_v3, %v319_v62  ;;  %v328_v23 = vmul.f32 %v769_v10, %v327_v8  ;;  %v343_v25 = vrot.slane %v216_v40, %v1180_v46 }
  0xd2   : > { %v297_v60 = vadd.f32 %v296_v53, %v289_v52  ;;  %v254_v5 = vadd.f32 %v253_v55, %v246_v59  ;;  %v336_v29 = vmul.f32 %v770_v16, %v335_v14  ;;  %v776_v52 = vld [vmem:[%s1336_s2 + $0x98] sm:$0xff] }
  0xd3   : > { %v344_v33 = vmul.f32 %v771_v26, %v343_v25 }
  0xd4   : > { %v305_v6 = vadd.f32 %v304_v61, %v297_v60  ;;  %v262_v11 = vadd.f32 %v261_v63, %v254_v5 }
  0xd6   : > { %v313_v12 = vadd.f32 %v312_v7, %v305_v6  ;;  %v270_v17 = vadd.f32 %v269_v9, %v262_v11 }
  0xd8   : > { %v321_v22 = vadd.f32 %v320_v13, %v313_v12  ;;  %v278_v27 = vadd.f32 %v277_v15, %v270_v17 }
  0xda   : > { %v329_v28 = vadd.f32 %v328_v23, %v321_v22  ;;  %v281_v36 = vadd.f32 %v763_v31, %v278_v27 }
  0xdc   : > { %v337_v32 = vadd.f32 %v336_v29, %v329_v28  ;;  %v282_v39 = vmax.f32 %v281_v36, 0.0  ;;  %v441_v36 = vld [vmem:[%s1100_s10] ss:$8 sm:$0x3] }
  0xde   : > { %v345_v37 = vadd.f32 %v344_v33, %v337_v32  ;;  %v445_v33 = vpop.permute.xlu1 %444 }
  0xe0   : > { %v348_v38 = vadd.f32 %v772_v34, %v345_v37 }
  0xe2   : > { %v349_v40 = vmax.f32 %v348_v38, 0.0  ;;  %v463_v34 = vpop.permute.xlu1 %462  ;;  %v451_v38 = vrot.slane %v441_v36, %v1137_v18 }
  0xe4   : > { %v350_v41 = vadd.f32 %v349_v40, %v282_v39  ;;  %v455_v39 = vrot.slane %v441_v36, %v1139_v19  ;;  %v785_v40 = vld [vmem:[%s1100_s10 + $0x1] ss:$8 sm:$0x3] }
  0xe6   : > { %v356_v44 = vrot.slane %v350_v41, %v1137_v18  ;;  %v363_v45 = vrot.slane %v350_v41, %v1139_v19  ;;  %v371_v47 = vrot.slane %v350_v41, %v1141_v20  ;;  %v379_v51 = vrot.slane %v350_v41, %v1143_v21  ;;  %v777_v20 = vld [vmem:[%s1336_s2 + $0xa0] sm:$0xff]  ;;  %v778_v21 = vld [vmem:[%s1336_s2 + $0xa8] sm:$0xff]  ;;  %v498_v37 = vpop.permute.xlu1 %497 }
  0xe7   : > { %v387_v55 = vrot.slane %v350_v41, %v1151_v24  ;;  %v395_v58 = vrot.slane %v350_v41, %v1159_v30  ;;  %v403_v61 = vrot.slane %v350_v41, %v1165_v35  ;;  %v779_v24 = vld [vmem:[%s1336_s2 + $0xb0] sm:$0xff]  ;;  %v411_v2 = vrot.slane %v350_v41, %v1180_v46  ;;  %v780_v30 = vld [vmem:[%s1336_s2 + $0xb8] sm:$0xff] }
  0xe8   : > { %v357_v49 = vmul.f32 %v773_v42, %v356_v44  ;;  %v364_v50 = vmul.f32 %v774_v43, %v363_v45  ;;  %v372_v54 = vmul.f32 %v775_v48, %v371_v47  ;;  %v380_v57 = vmul.f32 %v776_v52, %v379_v51  ;;  %v781_v35 = vld [vmem:[%s1336_s2 + $0x110] sm:$0xff]  ;;  %v787_v43 = vld [vmem:[%s1100_s10 + $0x2] ss:$8 sm:$0x3]  ;;  %v474_v48 = vpop.permute.xlu0 %473 }
  0xe9   : > { %v388_v60 = vmul.f32 %v777_v20, %v387_v55  ;;  %v396_v63 = vmul.f32 %v778_v21, %v395_v58  ;;  %v404_v4 = vmul.f32 %v779_v24, %v403_v61  ;;  %v412_v6 = vmul.f32 %v780_v30, %v411_v2 }
  0xea   : > { %v365_v53 = vadd.f32 %v364_v50, %v357_v49  ;;  %v458_v41 = vmul.f32 %v451_v38, %v445_v33  ;;  %v459_v42 = vmul.f32 %v455_v39, %v445_v33  ;;  %v480_v44 = vrot.slane %v785_v40, %v1137_v18  ;;  %v522_v47 = vpop.permute.xlu1 %521 }
  0xeb   : > { %v484_v45 = vrot.slane %v785_v40, %v1139_v19  ;;  %v504_v49 = vrot.slane %v787_v43, %v1137_v18  ;;  %v508_v50 = vrot.slane %v787_v43, %v1139_v19 }
  0xec   : > { %v373_v56 = vadd.f32 %v372_v54, %v365_v53  ;;  %v465_v51 = vadd.f32 %v463_v34, %v458_v41  ;;  %v466_v52 = vadd.f32 %v463_v34, %v459_v42  ;;  %v789_v53 = vld [vmem:[%s1100_s10 + $0x3] ss:$8 sm:$0x3]  ;;  %v487_v54 = vmul.f32 %v480_v44, %v474_v48 }
  0xed   : > { %v488_v55 = vmul.f32 %v484_v45, %v474_v48  ;;  %v528_v20 = vrot.slane %v789_v53, %v1137_v18  ;;  %v511_v58 = vmul.f32 %v504_v49, %v498_v37  ;;  %v512_v21 = vmul.f32 %v508_v50, %v498_v37 }
  0xee   : > { %v381_v59 = vadd.f32 %v380_v57, %v373_v56  ;;  %v532_v56 = vrot.slane %v789_v53, %v1139_v19  ;;  %v546_v57 = vpop.permute.xlu1 %545 }
  0xef   : > { %v490_v61 = vadd.f32 %v488_v55, %v466_v52 }
  0xf0   : > { %v389_v62 = vadd.f32 %v388_v60, %v381_v59  ;;  %v791_v59 = vld [vmem:[%s1100_s10 + $0x4] ss:$8 sm:$0x3]  ;;  %v489_v60 = vadd.f32 %v487_v54, %v465_v51  ;;  %v536_v2 = vmul.f32 %v532_v56, %v522_v47 }
  0xf1   : > { %v552_v24 = vrot.slane %v791_v59, %v1137_v18 }
  0xf2   : > { %v397_v3 = vadd.f32 %v396_v63, %v389_v62  ;;  %v556_v62 = vrot.slane %v791_v59, %v1139_v19  ;;  %v535_v63 = vmul.f32 %v528_v20, %v522_v47  ;;  %v513_v30 = vadd.f32 %v511_v58, %v489_v60 }
  0xf4   : > { %v405_v5 = vadd.f32 %v404_v4, %v397_v3  ;;  %v514_v3 = vadd.f32 %v512_v21, %v490_v61  ;;  %v793_v4 = vld [vmem:[%s1100_s10 + $0x5] ss:$8 sm:$0x3] }
  0xf6   : > { %v413_v7 = vadd.f32 %v412_v6, %v405_v5  ;;  %v570_v5 = vpop.permute.xlu1 %569  ;;  %v576_v6 = vrot.slane %v793_v4, %v1137_v18 }
  0xf8   : > { %v416_v8 = vadd.f32 %v781_v35, %v413_v7  ;;  %v580_v35 = vrot.slane %v793_v4, %v1139_v19  ;;  %v559_v7 = vmul.f32 %v552_v24, %v546_v57 }
  0xfa   : > { %v418_v9 = vsel %vm417_vm0, %v416_v8, -inf }
  0xfb   : > { %v419_v10 = vrot.slane %v418_v9, 4 }
  0xfd   : > { %v420_v11 = vmax.f32 %v418_v9, %v419_v10  ;;  %v537_v9 = vadd.f32 %v535_v63, %v513_v30  ;;  %v538_v10 = vadd.f32 %v536_v2, %v514_v3 }
  0xff   : > { %v421_v12 = vrot.slane %v420_v11, 2 }
 0x101   : > { %v422_v46 = vmax.f32 %v420_v11, %v421_v12  ;;  %v795_v11 = vld [vmem:[%s1100_s10 + $0x6] ss:$8 sm:$0x3] }
 0x102   : > { %v600_v12 = vrot.slane %v795_v11, %v1137_v18 }
 0x103   : > { %v423_v13 = vrot.slane %v422_v46, 1 }
 0x105   : > { %v424_v14 = vmax.f32 %v422_v46, %v423_v13  ;;  %v604_v46 = vrot.slane %v795_v11, %v1139_v19  ;;  %v594_v13 = vpop.permute.xlu1 %593 }
 0x107   : > { %v425_v15 = vsub.f32 %v416_v8, %v424_v14  ;;  %v560_v8 = vmul.f32 %v556_v62, %v546_v57  ;;  %v561_v14 = vadd.f32 %v559_v7, %v537_v9 }
 0x109   : > { %v426_v16 = vmul.f32 1.442695, %v425_v15  ;;  %v562_v15 = vadd.f32 %v560_v8, %v538_v10 }
 0x10b   : > { %855 = vpow2.f32 %v426_v16  ;;  %v583_v16 = vmul.f32 %v576_v6, %v570_v5 }
 0x115   : > { %v856_v17 = vpop.eup %855 }
 0x116   : > { %v428_v22 = vsel %vm417_vm0, %v856_v17, 0.0 }
 0x117   : > { %v429_v23 = vrot.slane %v428_v22, 4 }
 0x119   : > { %v430_v25 = vadd.f32 %v429_v23, %v428_v22  ;;  %v797_v22 = vld [vmem:[%s1100_s10 + $0x7] ss:$8 sm:$0x3]  ;;  %s805_s10 = sshll.u32 %s1001_s16, 8  ;;  %s649_s16 = scalar_lea.sflag [#allocation4], %s1085_s29 }
 0x11a   : > { %v624_v23 = vrot.slane %v797_v22, %v1137_v18  ;;  %s1290_s11 = scalar_lea.hbm %s1337_s3, %s805_s10 }
 0x11b   : > { %v431_v26 = vrot.slane %v430_v25, 2 }
 0x11d   : > { %v432_v27 = vadd.f32 %v431_v26, %v430_v25  ;;  %v628_v25 = vrot.slane %v797_v22, %v1139_v19  ;;  %v585_v26 = vadd.f32 %v583_v16, %v561_v14 }
 0x11f   : > { %v433_v28 = vrot.slane %v432_v27, 1 }
 0x121   : > { %v434_v29 = vadd.f32 %v433_v28, %v432_v27  ;;  %v607_v28 = vmul.f32 %v600_v12, %v594_v13 }
 0x123   : > { %857 = vrcp.f32 %v434_v29  ;;  %v608_v29 = vmul.f32 %v604_v46, %v594_v13 }
 0x12d   : > { %v858_v31 = vpop.eup %857 }
 0x12e   : > { %v436_v32 = vmul.f32 %v858_v31, %v856_v17  ;;  %v584_v17 = vmul.f32 %v580_v35, %v570_v5  ;;  %v618_v31 = vpop.permute.xlu1 %617 }
 0x12f   : > { %v631_v34 = vmul.f32 %v624_v23, %v618_v31  ;;  %v632_v36 = vmul.f32 %v628_v25, %v618_v31 }
 0x130   : > { %639 = vperm.xlu1 %853, %v436_v32   ;;  %v586_v27 = vadd.f32 %v584_v17, %v562_v15  ;;  %v609_v32 = vadd.f32 %v607_v28, %v585_v26 }
 0x132   : > { %v610_v33 = vadd.f32 %v608_v29, %v586_v27  ;;  %v633_v37 = vadd.f32 %v631_v34, %v609_v32 }
 0x134   : > { %v634_v38 = vadd.f32 %v632_v36, %v610_v33  ;;  %v635_v39 = vmax.f32 %v633_v37, 0.0 }
 0x136   : > { %v636_v40 = vmax.f32 %v634_v38, 0.0 }
 0x1af   : > { %v640_v18 = vpop.permute.xlu1 %639 }
 0x1b0   : > { %v642_v19 = vmul.f32 %v640_v18, %v635_v39  ;;  %v643_v41 = vmul.f32 %v640_v18, %v636_v40 }
 0x1b2   : > { %v644_v42 = vadd.f32 %v642_v19, %v1102_v0  ;;  %v645_v43 = vadd.f32 %v643_v41, %v1104_v1 }
 0x1b4   : > { %646 = vst [vmem:[%s201_s6] sm:$0xff] %v644_v42  ;;  %647 = vst [vmem:[%s201_s6 + $0x8] sm:$0xff] %v645_v43 }
 0x1b5   : > { %902 = shalt.err (!%p899_p5)
}
 0x1b6   : > { %s903_s29 = scalar_lea.hbm %s1290_s11, 256  ;;  %s907_s27 = scalar_lea.hbm %s1337_s3, 512 }
 0x1b7   : > { %p904_p8 = scmp.ne.s32.totalorder %s1290_s11, %s903_s29  ;;  %p908_p1 = scmp.lt.u32.totalorder %s1290_s11, %s1337_s3 }
 0x1b8   : > { %p909_p3 = scmp.lt.u32.totalorder %s907_s27, %s903_s29  ;;  %p911_p6 = scmp.lt.u32.totalorder %s903_s29, %s1290_s11 }
 0x1b9   : > { %p905_p9 = pnand %p904_p8, %p1346_p12 }
 0x1ba   : > { %p910_p11 = por %p909_p3, %p908_p1 }
 0x1bb   : > { %p906_p0 = pneg %p905_p9 }
 0x1bc   : > { %p912_p13 = por %p911_p6, %p910_p11 }
 0x1be   : > { %p913_p7 = pnand %p912_p13, %p906_p0 }
 0x1c0   : > { %916 = shalt.err (!%p913_p7)
}
 0x1c1   : > { %808 = dma.vmem_to_hbm [thread:$0]  (%p1346_p12), %s1292_s8, 256, %s1290_s11, %s649_s16  }
 0x1c2 PF: > { %s675_s7 = sand.u32 1, %s943_s12   ;;  %p1347_p10 = scmp.ne.s32.totalorder %s1342_s25, 0 }
 0x1c3   : > { %p1348_p2 = scmp.ge.s32.totalorder %s955_s15, 2  ;;  %s676_s4 = scalar_lea.sflag [#allocation4], %s675_s7 }
 0x1c5   : > { %p815_p4 = pnand %p1348_p2, %p1347_p10 }
 0x1c7   : > { %938 = dma.done.wait (!%p815_p4), %s676_s4, 256  }
 0x1c8   : > { %940 = vsyncadd (!%p815_p4), %s676_s4, 4294967040  ;;  %p16_p5 = scmp.ge.s32.totalorder %s1005_s18, 4   ;;  %s1349_s12 = smov %s947_s13 }
 0x1c9   : > { %s1350_s13 = smov %s951_s14  ;;  %s1351_s14 = smov %s1017_s21 }
 0x1ca   : > { %s1352_s15 = smov %s1005_s18  ;;  %18 = sbr.rel (!%p16_p5) target bundleno = 5 (0x5), region = 122 }
 0x1d1   :  { %681 = vsyncpa [#allocation3], 1 }
 0x1d2   :  { %683 = vsyncpa [#allocation3 + $0x1], 1 }
 0x1d3   :  { %684 = vsyncpa [#allocation4], 1 }
 0x1d4   :  { %686 = vsyncpa [#allocation4 + $0x1], 1 }

</bundles_post_ra>
